<compile_context>
chip_gen: v7x
topology: tpu7x:2x2x1
jax: 0.10.0
libtpu: 0.0.40
codegen_flags: <defaults>
</compile_context>

<pallas_src>
import functools

import jax
import jax.numpy as jnp
from jax.experimental import pallas as pl
from jax.experimental.pallas import tpu as pltpu


def _matmul_nt(a, b):
    # a @ b.T without materializing a transpose (contract last dims), f32 accum.
    return jax.lax.dot_general(
        a, b, (((1,), (1,)), ((), ())), preferred_element_type=jnp.float32
    )


def _contrast_kernel(zlocs_ref, zglo_ref, w1_ref, b1_ref, w2_ref, b2_ref,
                     neg_ref, pos_ref, negt_ref, post_ref,
                     out_ref,
                     zg_n_ref, gg_neg_ref, gg_pos_ref, *, tau, lam):
    inv_tau = 1.0 / tau
    l = pl.program_id(0)
    n = neg_ref.shape[0]

    def proj_norm(z):
        # 2-layer MLP with ELU, then row L2-normalization (rsqrt, no divide).
        h = jnp.dot(z, w1_ref[...], preferred_element_type=jnp.float32) + b1_ref[...]
        h = jnp.where(h > 0, h, jnp.exp(h) - 1.0)      # ELU(alpha=1)
        p = jnp.dot(h, w2_ref[...], preferred_element_type=jnp.float32) + b2_ref[...]
        inv_norm = jax.lax.rsqrt(jnp.sum(p * p, axis=-1, keepdims=True))
        return p * inv_norm

    # Single eye mask, reused for both diag removals.
    row = jax.lax.broadcasted_iota(jnp.int32, (n, n), 0)
    col = jax.lax.broadcasted_iota(jnp.int32, (n, n), 1)
    eye = row == col

    neg = neg_ref[...].astype(jnp.float32)
    pos = pos_ref[...].astype(jnp.float32)
    negt = negt_ref[...].astype(jnp.float32)
    post = post_ref[...].astype(jnp.float32)

    # ---- z_glo-only work: computed once (grid step 0), cached in VMEM scratch ----
    @pl.when(l == 0)
    def _():
        zg_n = proj_norm(zglo_ref[...])
        zg_n_ref[...] = zg_n
        m_gg = jnp.exp(_matmul_nt(zg_n * inv_tau, zg_n))          # (N, N), symmetric
        m_gg_nd = jnp.where(eye, 0.0, m_gg)                       # diag removed
        # Stored lane-dense as (1, N); m_gg symmetry lets us use transposed masks.
        gg_neg_ref[...] = jnp.sum(m_gg * negt, axis=0, keepdims=True)
        gg_pos_ref[...] = jnp.sum(m_gg_nd * post, axis=0, keepdims=True)

    zg_n = zg_n_ref[...]

    # ---- per-z_loc work ----
    zl_n = proj_norm(zlocs_ref[...])
    zl_ns = zl_n * inv_tau
    m_lg = jnp.exp(_matmul_nt(zl_ns, zg_n))                       # (N, N)
    m_ll = jnp.exp(_matmul_nt(zl_ns, zl_n))                       # (N, N)
    m_ll_nd = jnp.where(eye, 0.0, m_ll)

    # loc -> glo branch (rows indexed by loc node): fused masked row reductions,
    # loss in log space (no N^2 broadcast divide, mat_l never materialized).
    den_l = jnp.sum((m_lg + m_ll) * neg, axis=1, keepdims=True) + 1e-8
    num_l = jnp.sum((m_lg + m_ll_nd) * pos, axis=1, keepdims=True)
    lori_loc = -jnp.sum(jnp.log(num_l) - jnp.log(den_l)) / n

    # glo -> loc branch: m_gl == m_lg.T is consumed via column reductions of m_lg
    # against the transposed masks (no extra matmul, no extra exp, no transpose).
    den_g = jnp.sum(m_lg * negt, axis=0, keepdims=True) + gg_neg_ref[...] + 1e-8
    num_g = jnp.sum(m_lg * post, axis=0, keepdims=True) + gg_pos_ref[...]
    lori_glo = -jnp.sum(jnp.log(num_g) - jnp.log(den_g)) / n

    out_ref[l, 0] = lam * lori_loc + (1.0 - lam) * lori_glo


def multi_contrast_forward(z_mp, z_mp_locs, pos_arg, params, neg, pos_mask, tau, lam):
    # NOTE: matching torch semantics -- the `pos` argument of forward()/cal() is
    # shadowed by self.pos inside cal(), so pos_arg is intentionally unused.
    del pos_arg
    w1, b1, w2, b2 = params
    z_locs = jnp.stack(z_mp_locs, axis=0)                         # (L, N, H)
    num_locs, n, h = z_locs.shape

    # Masks hold exact 0/1 values -> bf16 is lossless and halves mask DMA bytes.
    neg_bf = neg.astype(jnp.bfloat16)
    pos_bf = pos_mask.astype(jnp.bfloat16)
    negt_bf = neg_bf.T
    post_bf = pos_bf.T

    kernel = functools.partial(_contrast_kernel, tau=float(tau), lam=float(lam))
    const = lambda l: (0, 0)
    losses = pl.pallas_call(
        kernel,
        out_shape=jax.ShapeDtypeStruct((num_locs, 1), jnp.float32),
        grid_spec=pltpu.PrefetchScalarGridSpec(
            num_scalar_prefetch=0,
            grid=(num_locs,),
            in_specs=[
                pl.BlockSpec((None, n, h), lambda l: (l, 0, 0)),  # z_locs (per step)
                pl.BlockSpec((n, h), const),                      # z_glo (resident)
                pl.BlockSpec((h, h), const),                      # w1
                pl.BlockSpec((1, h), const),                      # b1
                pl.BlockSpec((h, h), const),                      # w2
                pl.BlockSpec((1, h), const),                      # b2
                pl.BlockSpec((n, n), const),                      # neg
                pl.BlockSpec((n, n), const),                      # pos
                pl.BlockSpec((n, n), const),                      # neg.T
                pl.BlockSpec((n, n), const),                      # pos.T
            ],
            out_specs=pl.BlockSpec(memory_space=pltpu.MemorySpace.SMEM),
            scratch_shapes=[
                pltpu.VMEM((n, h), jnp.float32),   # cached normalized proj(z_glo)
                pltpu.VMEM((1, n), jnp.float32),   # cached sum(m_gg * neg, glo rows)
                pltpu.VMEM((1, n), jnp.float32),   # cached sum(m_gg_nodiag * pos, glo rows)
            ]),
        compiler_params=pltpu.CompilerParams(
            dimension_semantics=("arbitrary",)),
    )(z_locs, z_mp, w1, b1, w2, b2, neg_bf, pos_bf, negt_bf, post_bf)
    return jnp.sum(losses)


def build_masks(sim_raw, num_pos):
    # Host-side setup glue, mirrors __init__ / neg_mask_init / pos_mask_init.
    n = sim_raw.shape[0]
    sim_mat = sim_raw.at[jnp.arange(n), jnp.arange(n)].set(1.1)   # fill_diagonal(1.1)
    neg = jnp.where(sim_mat > 0, 0.0, 1.0).astype(jnp.float32)
    top_idx = jnp.argsort(-sim_mat, axis=1)[:, :num_pos]
    pos_topk = jnp.zeros((n, n), jnp.float32)
    pos_topk = pos_topk.at[jnp.arange(n)[:, None], top_idx].set(1.0)
    pos = jnp.where(sim_mat > 0, pos_topk, sim_mat).astype(jnp.float32)
    return sim_mat, neg, pos


def _reference_cal(z_loc, z_glo, params, neg, pos, tau, lam):
    # Pure-JAX reference of cal() for a correctness cross-check.
    w1, b1, w2, b2 = params

    def proj(z):
        h = z @ w1 + b1
        h = jnp.where(h > 0, h, jnp.exp(h) - 1.0)
        return h @ w2 + b2

    def sim(a, b):
        na = jnp.linalg.norm(a, axis=-1, keepdims=True)
        nb = jnp.linalg.norm(b, axis=-1, keepdims=True)
        return jnp.exp((a @ b.T) / (na @ nb.T) / tau)

    zl, zg = proj(z_loc), proj(z_glo)
    m_lg, m_ll, m_gg = sim(zl, zg), sim(zl, zl), sim(zg, zg)
    m_gl = m_lg.T
    m_ll_ = m_ll - jnp.diag(jnp.diag(m_ll))
    m_gg_ = m_gg - jnp.diag(jnp.diag(m_gg))
    den_l = (m_lg * neg).sum(1, keepdims=True) + (m_ll * neg).sum(1, keepdims=True) + 1e-8
    lori_loc = -jnp.log((((m_lg + m_ll_) / den_l) * pos).sum(-1)).mean()
    den_g = (m_gl * neg).sum(1, keepdims=True) + (m_gg * neg).sum(1, keepdims=True) + 1e-8
    lori_glo = -jnp.log((((m_gl + m_gg_) / den_g) * pos).sum(-1)).mean()
    return lam * lori_loc + (1 - lam) * lori_glo


if __name__ == "__main__":
    N, H, num_pos = 16, 32, 4
    tau, lam = 0.8, 0.5

    key = jax.random.PRNGKey(0)
    k1, k2, k3, k4, k5, k6, k7, k8 = jax.random.split(key, 8)

    # Xavier-normal (gain=1.414) Linear weights, default-style uniform biases.
    std = 1.414 * (2.0 / (H + H)) ** 0.5
    w1 = jax.random.normal(k1, (H, H), jnp.float32) * std
    w2 = jax.random.normal(k2, (H, H), jnp.float32) * std
    bound = 1.0 / (H ** 0.5)
    b1 = jax.random.uniform(k3, (1, H), jnp.float32, -bound, bound)
    b2 = jax.random.uniform(k4, (1, H), jnp.float32, -bound, bound)
    params = (w1, b1, w2, b2)

    # Non-negative synthetic similarity matrix (zeros where no relation).
    sim_raw = jnp.maximum(jax.random.normal(k5, (N, N), jnp.float32), 0.0)
    sim_raw = 0.5 * (sim_raw + sim_raw.T)
    _, neg, pos_mask = build_masks(sim_raw, num_pos)

    z_mp = jax.random.normal(k6, (N, H), jnp.float32)
    z_mp_locs = [jax.random.normal(k7, (N, H), jnp.float32),
                 jax.random.normal(k8, (N, H), jnp.float32)]

    loss = multi_contrast_forward(z_mp, z_mp_locs, pos_mask, params, neg,
                                  pos_mask, tau, lam)
    loss = jax.block_until_ready(loss)

    ref = sum(_reference_cal(zl, z_mp, params, neg, pos_mask, tau, lam)
              for zl in z_mp_locs)
    assert jnp.allclose(loss, ref, rtol=1e-4, atol=1e-4), (loss, ref)

    print("KERNEL_OK")
</pallas_src>

<mosaic_0001>
module attributes {stable_mosaic.version = 11 : i64} {
  func.func @_contrast_kernel(%arg0: i32, %arg1: memref<1x16x32xf32, #tpu.memory_space<vmem>>, %arg2: memref<16x32xf32, #tpu.memory_space<vmem>>, %arg3: memref<32x32xf32, #tpu.memory_space<vmem>>, %arg4: memref<1x32xf32, #tpu.memory_space<vmem>>, %arg5: memref<32x32xf32, #tpu.memory_space<vmem>>, %arg6: memref<1x32xf32, #tpu.memory_space<vmem>>, %arg7: memref<16x16xbf16, #tpu.memory_space<vmem>>, %arg8: memref<16x16xbf16, #tpu.memory_space<vmem>>, %arg9: memref<16x16xbf16, #tpu.memory_space<vmem>>, %arg10: memref<16x16xbf16, #tpu.memory_space<vmem>>, %arg11: memref<2x1xf32, #tpu.memory_space<smem>>, %arg12: memref<16x32xf32, #tpu.memory_space<vmem>>, %arg13: memref<1x16xf32, #tpu.memory_space<vmem>>, %arg14: memref<1x16xf32, #tpu.memory_space<vmem>>) attributes {dimension_semantics = [#tpu.dimension_semantics<arbitrary>], iteration_bounds = array<i64: 2>, scalar_prefetch = 0 : i64, scratch_operands = 3 : i64, tpu.core_type = #tpu.core_type<tc>, window_params = [{transform_indices = @transform_0, window_bounds = array<i64: 1, 16, 32>}, {pipeline_mode = #tpu.pipeline_mode<synchronous>, transform_indices = @transform_1, window_bounds = array<i64: 16, 32>}, {pipeline_mode = #tpu.pipeline_mode<synchronous>, transform_indices = @transform_2, window_bounds = array<i64: 32, 32>}, {pipeline_mode = #tpu.pipeline_mode<synchronous>, transform_indices = @transform_3, window_bounds = array<i64: 1, 32>}, {pipeline_mode = #tpu.pipeline_mode<synchronous>, transform_indices = @transform_4, window_bounds = array<i64: 32, 32>}, {pipeline_mode = #tpu.pipeline_mode<synchronous>, transform_indices = @transform_5, window_bounds = array<i64: 1, 32>}, {pipeline_mode = #tpu.pipeline_mode<synchronous>, transform_indices = @transform_6, window_bounds = array<i64: 16, 16>}, {pipeline_mode = #tpu.pipeline_mode<synchronous>, transform_indices = @transform_7, window_bounds = array<i64: 16, 16>}, {pipeline_mode = #tpu.pipeline_mode<synchronous>, transform_indices = @transform_8, window_bounds = array<i64: 16, 16>}, {pipeline_mode = #tpu.pipeline_mode<synchronous>, transform_indices = @transform_9, window_bounds = array<i64: 16, 16>}, {transform_indices = @transform_10, window_bounds = array<i64: 2, 1>}]} {
    %0 = tpu.iota {dimensions = array<i32: 0>} : vector<16x16xi32>
    %1 = tpu.iota {dimensions = array<i32: 1>} : vector<16x16xi32>
    %2 = arith.cmpi eq, %0, %1 : vector<16x16xi32>
    %c0 = arith.constant 0 : index
    %c0_0 = arith.constant 0 : index
    %3 = vector.load %arg7[%c0, %c0_0] : memref<16x16xbf16, #tpu.memory_space<vmem>>, vector<16x16xbf16>
    %4 = arith.extf %3 : vector<16x16xbf16> to vector<16x16xf32>
    %c0_1 = arith.constant 0 : index
    %c0_2 = arith.constant 0 : index
    %5 = vector.load %arg8[%c0_1, %c0_2] : memref<16x16xbf16, #tpu.memory_space<vmem>>, vector<16x16xbf16>
    %6 = arith.extf %5 : vector<16x16xbf16> to vector<16x16xf32>
    %c0_3 = arith.constant 0 : index
    %c0_4 = arith.constant 0 : index
    %7 = vector.load %arg9[%c0_3, %c0_4] : memref<16x16xbf16, #tpu.memory_space<vmem>>, vector<16x16xbf16>
    %8 = arith.extf %7 : vector<16x16xbf16> to vector<16x16xf32>
    %c0_5 = arith.constant 0 : index
    %c0_6 = arith.constant 0 : index
    %9 = vector.load %arg10[%c0_5, %c0_6] : memref<16x16xbf16, #tpu.memory_space<vmem>>, vector<16x16xbf16>
    %10 = arith.extf %9 : vector<16x16xbf16> to vector<16x16xf32>
    %c0_i32 = arith.constant 0 : i32
    %11 = arith.cmpi eq, %arg0, %c0_i32 : i32
    %12 = arith.extui %11 : i1 to i32
    %c0_i32_7 = arith.constant 0 : i32
    %13 = arith.cmpi ne, %12, %c0_i32_7 : i32
    scf.if %13 {
      %c0_48 = arith.constant 0 : index
      %c0_49 = arith.constant 0 : index
      %92 = vector.load %arg2[%c0_48, %c0_49] : memref<16x32xf32, #tpu.memory_space<vmem>>, vector<16x32xf32>
      %c0_50 = arith.constant 0 : index
      %c0_51 = arith.constant 0 : index
      %93 = vector.load %arg3[%c0_50, %c0_51] : memref<32x32xf32, #tpu.memory_space<vmem>>, vector<32x32xf32>
      %cst_52 = arith.constant dense<0.000000e+00> : vector<16x32xf32>
      %94 = tpu.matmul %92, %93, %cst_52 {dimension_numbers = #tpu.dot_dimension_numbers<[1], [0], [0], [1], [0, 0, 1, 1], [], []>} : vector<16x32xf32>, vector<32x32xf32>, vector<16x32xf32> -> vector<16x32xf32>
      %c0_53 = arith.constant 0 : index
      %c0_54 = arith.constant 0 : index
      %95 = vector.load %arg4[%c0_53, %c0_54] : memref<1x32xf32, #tpu.memory_space<vmem>>, vector<1x32xf32>
      %96 = vector.broadcast %95 : vector<1x32xf32> to vector<16x32xf32>
      %97 = arith.addf %94, %96 : vector<16x32xf32>
      %cst_55 = arith.constant 0.000000e+00 : f32
      %98 = vector.broadcast %cst_55 : f32 to vector<16x32xf32>
      %99 = arith.cmpf ogt, %97, %98 : vector<16x32xf32>
      %100 = math.exp %97 : vector<16x32xf32>
      %cst_56 = arith.constant 1.000000e+00 : f32
      %101 = vector.broadcast %cst_56 : f32 to vector<16x32xf32>
      %102 = arith.subf %100, %101 : vector<16x32xf32>
      %103 = arith.select %99, %97, %102 : vector<16x32xi1>, vector<16x32xf32>
      %c0_57 = arith.constant 0 : index
      %c0_58 = arith.constant 0 : index
      %104 = vector.load %arg5[%c0_57, %c0_58] : memref<32x32xf32, #tpu.memory_space<vmem>>, vector<32x32xf32>
      %cst_59 = arith.constant dense<0.000000e+00> : vector<16x32xf32>
      %105 = tpu.matmul %103, %104, %cst_59 {dimension_numbers = #tpu.dot_dimension_numbers<[1], [0], [0], [1], [0, 0, 1, 1], [], []>} : vector<16x32xf32>, vector<32x32xf32>, vector<16x32xf32> -> vector<16x32xf32>
      %c0_60 = arith.constant 0 : index
      %c0_61 = arith.constant 0 : index
      %106 = vector.load %arg6[%c0_60, %c0_61] : memref<1x32xf32, #tpu.memory_space<vmem>>, vector<1x32xf32>
      %107 = vector.broadcast %106 : vector<1x32xf32> to vector<16x32xf32>
      %108 = arith.addf %105, %107 : vector<16x32xf32>
      %109 = arith.mulf %108, %108 : vector<16x32xf32>
      %cst_62 = arith.constant dense<0.000000e+00> : vector<16xf32>
      %110 = vector.multi_reduction <add>, %109, %cst_62 [1] : vector<16x32xf32> to vector<16xf32>
      %111 = vector.shape_cast %110 : vector<16xf32> to vector<16x1xf32>
      %112 = math.rsqrt %111 : vector<16x1xf32>
      %113 = vector.broadcast %112 : vector<16x1xf32> to vector<16x32xf32>
      %114 = arith.mulf %108, %113 : vector<16x32xf32>
      %c0_63 = arith.constant 0 : index
      %c0_64 = arith.constant 0 : index
      %115 = vector.load %arg12[%c0_63, %c0_64] : memref<16x32xf32, #tpu.memory_space<vmem>>, vector<16x32xf32>
      tpu.vector_store %arg12[%c0_63, %c0_64], %114 {strides = array<i32>} : memref<16x32xf32, #tpu.memory_space<vmem>>, vector<16x32xf32>,
      %cst_65 = arith.constant 1.250000e+00 : f32
      %116 = vector.broadcast %cst_65 : f32 to vector<16x32xf32>
      %117 = arith.mulf %114, %116 : vector<16x32xf32>
      %cst_66 = arith.constant dense<0.000000e+00> : vector<16x16xf32>
      %118 = tpu.matmul %117, %114, %cst_66 {dimension_numbers = #tpu.dot_dimension_numbers<[1], [1], [0], [0], [0, 0, 1, 0], [], []>} : vector<16x32xf32>, vector<16x32xf32>, vector<16x16xf32> -> vector<16x16xf32>
      %119 = math.exp %118 : vector<16x16xf32>
      %cst_67 = arith.constant 0.000000e+00 : f32
      %120 = vector.broadcast %cst_67 : f32 to vector<16x16xf32>
      %121 = arith.select %2, %120, %119 : vector<16x16xi1>, vector<16x16xf32>
      %122 = arith.mulf %119, %8 : vector<16x16xf32>
      %cst_68 = arith.constant dense<0.000000e+00> : vector<16xf32>
      %123 = vector.multi_reduction <add>, %122, %cst_68 [0] : vector<16x16xf32> to vector<16xf32>
      %124 = vector.shape_cast %123 : vector<16xf32> to vector<1x16xf32>
      %c0_69 = arith.constant 0 : index
      %c0_70 = arith.constant 0 : index
      %125 = vector.load %arg13[%c0_69, %c0_70] : memref<1x16xf32, #tpu.memory_space<vmem>>, vector<1x16xf32>
      tpu.vector_store %arg13[%c0_69, %c0_70], %124 {strides = array<i32>} : memref<1x16xf32, #tpu.memory_space<vmem>>, vector<1x16xf32>,
      %126 = arith.mulf %121, %10 : vector<16x16xf32>
      %cst_71 = arith.constant dense<0.000000e+00> : vector<16xf32>
      %127 = vector.multi_reduction <add>, %126, %cst_71 [0] : vector<16x16xf32> to vector<16xf32>
      %128 = vector.shape_cast %127 : vector<16xf32> to vector<1x16xf32>
      %c0_72 = arith.constant 0 : index
      %c0_73 = arith.constant 0 : index
      %129 = vector.load %arg14[%c0_72, %c0_73] : memref<1x16xf32, #tpu.memory_space<vmem>>, vector<1x16xf32>
      tpu.vector_store %arg14[%c0_72, %c0_73], %128 {strides = array<i32>} : memref<1x16xf32, #tpu.memory_space<vmem>>, vector<1x16xf32>,
    } else {
    }
    %c0_8 = arith.constant 0 : index
    %c0_9 = arith.constant 0 : index
    %14 = vector.load %arg12[%c0_8, %c0_9] : memref<16x32xf32, #tpu.memory_space<vmem>>, vector<16x32xf32>
    %c0_10 = arith.constant 0 : index
    %c0_11 = arith.constant 0 : index
    %c0_12 = arith.constant 0 : index
    %15 = vector.load %arg1[%c0_10, %c0_11, %c0_12] : memref<1x16x32xf32, #tpu.memory_space<vmem>>, vector<1x16x32xf32>
    %16 = vector.shape_cast %15 : vector<1x16x32xf32> to vector<16x32xf32>
    %c0_13 = arith.constant 0 : index
    %c0_14 = arith.constant 0 : index
    %17 = vector.load %arg3[%c0_13, %c0_14] : memref<32x32xf32, #tpu.memory_space<vmem>>, vector<32x32xf32>
    %cst = arith.constant dense<0.000000e+00> : vector<16x32xf32>
    %18 = tpu.matmul %16, %17, %cst {dimension_numbers = #tpu.dot_dimension_numbers<[1], [0], [0], [1], [0, 0, 1, 1], [], []>} : vector<16x32xf32>, vector<32x32xf32>, vector<16x32xf32> -> vector<16x32xf32>
    %c0_15 = arith.constant 0 : index
    %c0_16 = arith.constant 0 : index
    %19 = vector.load %arg4[%c0_15, %c0_16] : memref<1x32xf32, #tpu.memory_space<vmem>>, vector<1x32xf32>
    %20 = vector.broadcast %19 : vector<1x32xf32> to vector<16x32xf32>
    %21 = arith.addf %18, %20 : vector<16x32xf32>
    %cst_17 = arith.constant 0.000000e+00 : f32
    %22 = vector.broadcast %cst_17 : f32 to vector<16x32xf32>
    %23 = arith.cmpf ogt, %21, %22 : vector<16x32xf32>
    %24 = math.exp %21 : vector<16x32xf32>
    %cst_18 = arith.constant 1.000000e+00 : f32
    %25 = vector.broadcast %cst_18 : f32 to vector<16x32xf32>
    %26 = arith.subf %24, %25 : vector<16x32xf32>
    %27 = arith.select %23, %21, %26 : vector<16x32xi1>, vector<16x32xf32>
    %c0_19 = arith.constant 0 : index
    %c0_20 = arith.constant 0 : index
    %28 = vector.load %arg5[%c0_19, %c0_20] : memref<32x32xf32, #tpu.memory_space<vmem>>, vector<32x32xf32>
    %cst_21 = arith.constant dense<0.000000e+00> : vector<16x32xf32>
    %29 = tpu.matmul %27, %28, %cst_21 {dimension_numbers = #tpu.dot_dimension_numbers<[1], [0], [0], [1], [0, 0, 1, 1], [], []>} : vector<16x32xf32>, vector<32x32xf32>, vector<16x32xf32> -> vector<16x32xf32>
    %c0_22 = arith.constant 0 : index
    %c0_23 = arith.constant 0 : index
    %30 = vector.load %arg6[%c0_22, %c0_23] : memref<1x32xf32, #tpu.memory_space<vmem>>, vector<1x32xf32>
    %31 = vector.broadcast %30 : vector<1x32xf32> to vector<16x32xf32>
    %32 = arith.addf %29, %31 : vector<16x32xf32>
    %33 = arith.mulf %32, %32 : vector<16x32xf32>
    %cst_24 = arith.constant dense<0.000000e+00> : vector<16xf32>
    %34 = vector.multi_reduction <add>, %33, %cst_24 [1] : vector<16x32xf32> to vector<16xf32>
    %35 = vector.shape_cast %34 : vector<16xf32> to vector<16x1xf32>
    %36 = math.rsqrt %35 : vector<16x1xf32>
    %37 = vector.broadcast %36 : vector<16x1xf32> to vector<16x32xf32>
    %38 = arith.mulf %32, %37 : vector<16x32xf32>
    %cst_25 = arith.constant 1.250000e+00 : f32
    %39 = vector.broadcast %cst_25 : f32 to vector<16x32xf32>
    %40 = arith.mulf %38, %39 : vector<16x32xf32>
    %cst_26 = arith.constant dense<0.000000e+00> : vector<16x16xf32>
    %41 = tpu.matmul %40, %14, %cst_26 {dimension_numbers = #tpu.dot_dimension_numbers<[1], [1], [0], [0], [0, 0, 1, 0], [], []>} : vector<16x32xf32>, vector<16x32xf32>, vector<16x16xf32> -> vector<16x16xf32>
    %42 = math.exp %41 : vector<16x16xf32>
    %cst_27 = arith.constant dense<0.000000e+00> : vector<16x16xf32>
    %43 = tpu.matmul %40, %38, %cst_27 {dimension_numbers = #tpu.dot_dimension_numbers<[1], [1], [0], [0], [0, 0, 1, 0], [], []>} : vector<16x32xf32>, vector<16x32xf32>, vector<16x16xf32> -> vector<16x16xf32>
    %44 = math.exp %43 : vector<16x16xf32>
    %cst_28 = arith.constant 0.000000e+00 : f32
    %45 = vector.broadcast %cst_28 : f32 to vector<16x16xf32>
    %46 = arith.select %2, %45, %44 : vector<16x16xi1>, vector<16x16xf32>
    %47 = arith.addf %42, %44 : vector<16x16xf32>
    %48 = arith.mulf %47, %4 : vector<16x16xf32>
    %cst_29 = arith.constant dense<0.000000e+00> : vector<16xf32>
    %49 = vector.multi_reduction <add>, %48, %cst_29 [1] : vector<16x16xf32> to vector<16xf32>
    %50 = vector.shape_cast %49 : vector<16xf32> to vector<16x1xf32>
    %cst_30 = arith.constant 9.99999993E-9 : f32
    %51 = vector.broadcast %cst_30 : f32 to vector<16x1xf32>
    %52 = arith.addf %50, %51 : vector<16x1xf32>
    %53 = arith.addf %42, %46 : vector<16x16xf32>
    %54 = arith.mulf %53, %6 : vector<16x16xf32>
    %cst_31 = arith.constant dense<0.000000e+00> : vector<16xf32>
    %55 = vector.multi_reduction <add>, %54, %cst_31 [1] : vector<16x16xf32> to vector<16xf32>
    %56 = vector.shape_cast %55 : vector<16xf32> to vector<16x1xf32>
    %57 = math.log %56 : vector<16x1xf32>
    %58 = math.log %52 : vector<16x1xf32>
    %59 = arith.subf %57, %58 : vector<16x1xf32>
    %60 = vector.shape_cast %59 : vector<16x1xf32> to vector<1x16x1xf32>
    %cst_32 = arith.constant dense<0.000000e+00> : vector<1xf32>
    %61 = vector.multi_reduction <add>, %60, %cst_32 [1, 2] : vector<1x16x1xf32> to vector<1xf32>
    %62 = vector.shape_cast %61 : vector<1xf32> to vector<1x1x1xf32>
    %63 = vector.extract %62[0, 0, 0] : f32 from vector<1x1x1xf32>
    %cst_33 = arith.constant 0.000000e+00 : f32
    %64 = arith.subf %cst_33, %63 : f32
    %cst_34 = arith.constant 1.600000e+01 : f32
    %65 = arith.divf %64, %cst_34 : f32
    %66 = arith.mulf %42, %8 : vector<16x16xf32>
    %cst_35 = arith.constant dense<0.000000e+00> : vector<16xf32>
    %67 = vector.multi_reduction <add>, %66, %cst_35 [0] : vector<16x16xf32> to vector<16xf32>
    %68 = vector.shape_cast %67 : vector<16xf32> to vector<1x16xf32>
    %c0_36 = arith.constant 0 : index
    %c0_37 = arith.constant 0 : index
    %69 = vector.load %arg13[%c0_36, %c0_37] : memref<1x16xf32, #tpu.memory_space<vmem>>, vector<1x16xf32>
    %70 = arith.addf %68, %69 : vector<1x16xf32>
    %cst_38 = arith.constant 9.99999993E-9 : f32
    %71 = vector.broadcast %cst_38 : f32 to vector<1x16xf32>
    %72 = arith.addf %70, %71 : vector<1x16xf32>
    %73 = arith.mulf %42, %10 : vector<16x16xf32>
    %cst_39 = arith.constant dense<0.000000e+00> : vector<16xf32>
    %74 = vector.multi_reduction <add>, %73, %cst_39 [0] : vector<16x16xf32> to vector<16xf32>
    %75 = vector.shape_cast %74 : vector<16xf32> to vector<1x16xf32>
    %c0_40 = arith.constant 0 : index
    %c0_41 = arith.constant 0 : index
    %76 = vector.load %arg14[%c0_40, %c0_41] : memref<1x16xf32, #tpu.memory_space<vmem>>, vector<1x16xf32>
    %77 = arith.addf %75, %76 : vector<1x16xf32>
    %78 = math.log %77 : vector<1x16xf32>
    %79 = math.log %72 : vector<1x16xf32>
    %80 = arith.subf %78, %79 : vector<1x16xf32>
    %81 = vector.shape_cast %80 : vector<1x16xf32> to vector<1x1x16xf32>
    %cst_42 = arith.constant dense<0.000000e+00> : vector<1xf32>
    %82 = vector.multi_reduction <add>, %81, %cst_42 [1, 2] : vector<1x1x16xf32> to vector<1xf32>
    %83 = vector.shape_cast %82 : vector<1xf32> to vector<1x1x1xf32>
    %84 = vector.extract %83[0, 0, 0] : f32 from vector<1x1x1xf32>
    %cst_43 = arith.constant 0.000000e+00 : f32
    %85 = arith.subf %cst_43, %84 : f32
    %cst_44 = arith.constant 1.600000e+01 : f32
    %86 = arith.divf %85, %cst_44 : f32
    %cst_45 = arith.constant 5.000000e-01 : f32
    %87 = arith.mulf %cst_45, %65 : f32
    %cst_46 = arith.constant 5.000000e-01 : f32
    %88 = arith.mulf %cst_46, %86 : f32
    %89 = arith.addf %87, %88 : f32
    %90 = arith.index_cast %arg0 : i32 to index
    %c0_47 = arith.constant 0 : index
    %91 = memref.load %arg11[%90, %c0_47] : memref<2x1xf32, #tpu.memory_space<smem>>
    memref.store %89, %arg11[%90, %c0_47] : memref<2x1xf32, #tpu.memory_space<smem>>
    return
  }
  func.func @transform_0(%arg0: i32) -> (i32, i32, i32) {
    %c0_i32 = arith.constant 0 : i32
    %c0_i32_0 = arith.constant 0 : i32
    %c0_i32_1 = arith.constant 0 : i32
    return %arg0, %c0_i32, %c0_i32_0 : i32, i32, i32
  }
  func.func @transform_1(%arg0: i32) -> (i32, i32) {
    %c0_i32 = arith.constant 0 : i32
    %c0_i32_0 = arith.constant 0 : i32
    %c0_i32_1 = arith.constant 0 : i32
    return %c0_i32, %c0_i32_0 : i32, i32
  }
  func.func @transform_2(%arg0: i32) -> (i32, i32) {
    %c0_i32 = arith.constant 0 : i32
    %c0_i32_0 = arith.constant 0 : i32
    %c0_i32_1 = arith.constant 0 : i32
    return %c0_i32, %c0_i32_0 : i32, i32
  }
  func.func @transform_3(%arg0: i32) -> (i32, i32) {
    %c0_i32 = arith.constant 0 : i32
    %c0_i32_0 = arith.constant 0 : i32
    %c0_i32_1 = arith.constant 0 : i32
    return %c0_i32, %c0_i32_0 : i32, i32
  }
  func.func @transform_4(%arg0: i32) -> (i32, i32) {
    %c0_i32 = arith.constant 0 : i32
    %c0_i32_0 = arith.constant 0 : i32
    %c0_i32_1 = arith.constant 0 : i32
    return %c0_i32, %c0_i32_0 : i32, i32
  }
  func.func @transform_5(%arg0: i32) -> (i32, i32) {
    %c0_i32 = arith.constant 0 : i32
    %c0_i32_0 = arith.constant 0 : i32
    %c0_i32_1 = arith.constant 0 : i32
    return %c0_i32, %c0_i32_0 : i32, i32
  }
  func.func @transform_6(%arg0: i32) -> (i32, i32) {
    %c0_i32 = arith.constant 0 : i32
    %c0_i32_0 = arith.constant 0 : i32
    %c0_i32_1 = arith.constant 0 : i32
    return %c0_i32, %c0_i32_0 : i32, i32
  }
  func.func @transform_7(%arg0: i32) -> (i32, i32) {
    %c0_i32 = arith.constant 0 : i32
    %c0_i32_0 = arith.constant 0 : i32
    %c0_i32_1 = arith.constant 0 : i32
    return %c0_i32, %c0_i32_0 : i32, i32
  }
  func.func @transform_8(%arg0: i32) -> (i32, i32) {
    %c0_i32 = arith.constant 0 : i32
    %c0_i32_0 = arith.constant 0 : i32
    %c0_i32_1 = arith.constant 0 : i32
    return %c0_i32, %c0_i32_0 : i32, i32
  }
  func.func @transform_9(%arg0: i32) -> (i32, i32) {
    %c0_i32 = arith.constant 0 : i32
    %c0_i32_0 = arith.constant 0 : i32
    %c0_i32_1 = arith.constant 0 : i32
    return %c0_i32, %c0_i32_0 : i32, i32
  }
  func.func @transform_10(%arg0: i32) -> (i32, i32) {
    %c0_i32 = arith.constant 0 : i32
    %c0_i32_0 = arith.constant 0 : i32
    %c0_i32_1 = arith.constant 0 : i32
    return %c0_i32, %c0_i32_0 : i32, i32
  }
}

</mosaic_0001>

<bundles_post_ra>
// kernel: tpu_custom_call.1
= control target key start
LH: loop header
LB: loop body
LE: loop exit
PB: predicated region body
PF: predicated region fallthrough
CT: control target
= control target key end

     0   :  { %s2297_s0 = inlined_call_operand.hbm [shape: f32[2,16,32], index: 0, kind: input, shape index: {}]   ;;  %s2298_s1 = inlined_call_operand.hbm [shape: f32[16,32], index: 1, kind: input, shape index: {}]   ;;  %s2299_s2 = inlined_call_operand.hbm [shape: f32[32,32], index: 2, kind: input, shape index: {}]   ;;  %s2300_s3 = inlined_call_operand.vmem [shape: f32[1,32], index: 3, kind: input, shape index: {}]   ;;  %s2301_s4 = inlined_call_operand.hbm [shape: f32[32,32], index: 4, kind: input, shape index: {}]   ;;  %s2302_s5 = inlined_call_operand.vmem [shape: f32[1,32], index: 5, kind: input, shape index: {}]   ;;  %s2303_s6 = inlined_call_operand.vmem [shape: bf16[16,16], index: 6, kind: input, shape index: {}]   ;;  %s2304_s7 = inlined_call_operand.vmem [shape: bf16[16,16], index: 7, kind: input, shape index: {}]   ;;  %s2305_s8 = inlined_call_operand.vmem [shape: bf16[16,16], index: 8, kind: input, shape index: {}]   ;;  %s2306_s9 = inlined_call_operand.vmem [shape: bf16[16,16], index: 9, kind: input, shape index: {}]   ;;  %s2307_s10 = inlined_call_operand.vmem [shape: f32[2,1], index: 10, kind: output, shape index: {}]  }
   0x1   :  { %2311 = sst [smem:[#allocation18_spill]] %s2302_s5 }
   0x2   :  { %2312 = sst [smem:[#allocation19_spill]] %s2307_s10 }
   0x3   :  { %15 = vsyncpa [#allocation6], 0 }
   0x4   :  { %17 = vsyncpa [#allocation6 + $0x1], 0 }
   0x5   :  { %18 = vsyncpa [#allocation9], 0 }
   0x6   :  { %19 = vsyncpa [#allocation12], 0 }
   0x7   :  { %20 = vsyncpa [#allocation7], 0  ;;  %s1929_s13 = smov 0   ;;  %s1931_s14 = smov 0  }
   0x8   :  { %s1933_s15 = smov 0   ;;  %s1935_s16 = smov 0  }
   0x9 LB: > { %s1948_s17 = sadd.s32 4294967295, %s1865_s16   ;;  %p46_p0 = scmp.ne.s32.totalorder %s1857_s14, %s1853_s13  ;;  %s1865_s16 = sphi %s1935_s16, %s2333_s16   ;;  %s1861_s15 = sphi %s1933_s15, %s2332_s15   ;;  %s1857_s14 = sphi %s1931_s14, %s2331_s14   ;;  %s1853_s13 = sphi %s1929_s13, %s2330_s13  }
   0xa   : > { %p2308_p1 = scmp.eq.s32.totalorder %s1948_s17, 0  ;;  %p1353_p2 = scmp.ge.s32.totalorder %s1865_s16, 1 }
   0xb   : > { %p267_p3 = scmp.lt.s32.totalorder %s1865_s16, 3  ;;  %s1867_s20 = smov [#allocation8]  }
   0xc   : > { %p1957_p5 = por %p2308_p1, %p46_p0  ;;  %s279_s21 = sshll.u32 %s1867_s20, 4  ;;  %s1965_s21 = int_to_ptr.vmem [resolvable:$true] %s279_s21 }
   0xd   : > { %p1961_p6 = pnand %p1353_p2, %p267_p3  ;;  %s1868_s23 = smov [#allocation10]  }
   0xe   : > { %s2313_s18 = scalar_select %p1957_p5, 1, 0 }
   0xf   : > { %s2314_s19 = scalar_select %p1961_p6, 1, 0 }
  0x10   : > { %p1590_p7 = pneg %p1961_p6  ;;  %s292_s24 = sshll.u32 %s1868_s23, 4  ;;  %s1975_s24 = int_to_ptr.vmem [resolvable:$true] %s292_s24 }
  0x11   : > { %s1869_s25 = smov [#allocation11]   ;;  %s1691_s29 = scalar_lea.hbm %s2298_s1, 256 }
  0x12   : > { %p1971_p8 = pnand %p1590_p7, %p2308_p1  ;;  %s1977_s26 = sshll.u32 %s1869_s25, 4  ;;  %s309_s26 = int_to_ptr.vmem [resolvable:$true] %s1977_s26 }
  0x13   : > { %p1692_p9 = scmp.ne.s32.totalorder %s2298_s1, %s1691_s29  ;;  %p1698_p13 = scmp.lt.u32.totalorder %s1691_s29, %s2298_s1 }
  0x14   : > { %p1987_p10 = pneg %p1971_p8 }
  0x16   : > { %p1694_p11 = pnand %p1987_p10, %p1692_p9 }
  0x18   : > { %p1695_p12 = pneg %p1694_p11 }
  0x1a   : > { %p1700_p0 = pnand %p1698_p13, %p1695_p12 }
  0x1c   : > { %1703 = shalt.err (!%p1700_p0)
}
  0x1d   : > { %s1704_s23 = scalar_lea.vmem %s1965_s21, 256  ;;  %p1712_p4 = scmp.lt.s32.totalorder %s1965_s21, %s1965_s21 }
  0x1e   : > { %p1705_p2 = scmp.ne.s32.totalorder %s1965_s21, %s1704_s23  ;;  %p1713_p1 = scmp.lt.s32.totalorder %s1704_s23, %s1704_s23 }
  0x20   : > { %p1707_p3 = pnand %p1705_p2, %p1987_p10  ;;  %p1714_p9 = por %p1713_p1, %p1712_p4 }
  0x22   : > { %p1708_p7 = pneg %p1707_p3 }
  0x24   : > { %p1715_p11 = pnand %p1714_p9, %p1708_p7 }
  0x26   : > { %1718 = shalt.err (!%p1715_p11)
}
  0x27   : > { %s1870_s25 = smov 128   ;;  %s1871_s27 = smov 8  }
  0x28   : > { %1593 = dma.hbm_to_vmem [thread:$0]  (!%p1971_p8), %s2298_s1, 256, %s1965_s21, [#allocation9], %s1870_s25, %s1870_s25, %s1871_s27  }
  0x29   : > { %s1719_s13 = scalar_lea.hbm %s2299_s2, 512 }
  0x2a   : > { %p1720_p1 = scmp.ne.s32.totalorder %s2299_s2, %s1719_s13  ;;  %p1726_p13 = scmp.lt.u32.totalorder %s1719_s13, %s2299_s2 }
  0x2c   : > { %p1722_p4 = pnand %p1720_p1, %p1987_p10 }
  0x2e   : > { %p1723_p12 = pneg %p1722_p4 }
  0x30   : > { %p1728_p0 = pnand %p1726_p13, %p1723_p12 }
  0x32   : > { %1731 = shalt.err (!%p1728_p0)
}
  0x33   : > { %s1732_s21 = scalar_lea.vmem %s1975_s24, 512  ;;  %p1740_p9 = scmp.lt.s32.totalorder %s1975_s24, %s1975_s24 }
  0x34   : > { %p1733_p2 = scmp.ne.s32.totalorder %s1975_s24, %s1732_s21  ;;  %p1741_p11 = scmp.lt.s32.totalorder %s1732_s21, %s1732_s21 }
  0x36   : > { %p1735_p3 = pnand %p1733_p2, %p1987_p10  ;;  %p1742_p1 = por %p1741_p11, %p1740_p9 }
  0x38   : > { %p1736_p7 = pneg %p1735_p3 }
  0x3a   : > { %p1743_p4 = pnand %p1742_p1, %p1736_p7 }
  0x3c   : > { %1746 = shalt.err (!%p1743_p4)
}
  0x3d   : > { %1596 = dma.hbm_to_vmem [thread:$0]  (!%p1971_p8), %s2299_s2, 512, %s1975_s24, [#allocation9], %s1870_s25, %s1870_s25, %s1871_s27  }
  0x3e   : > { %s1747_s30 = scalar_lea.hbm %s2301_s4, 512 }
  0x3f   : > { %p1748_p12 = scmp.ne.s32.totalorder %s2301_s4, %s1747_s30  ;;  %p1754_p2 = scmp.lt.u32.totalorder %s1747_s30, %s2301_s4 }
  0x41   : > { %p1750_p13 = pnand %p1748_p12, %p1987_p10 }
  0x43   : > { %p1751_p0 = pneg %p1750_p13 }
  0x45   : > { %p1756_p3 = pnand %p1754_p2, %p1751_p0 }
  0x47   : > { %1759 = shalt.err (!%p1756_p3)
}
  0x48   : > { %s1760_s21 = scalar_lea.vmem %s309_s26, 512  ;;  %p1768_p1 = scmp.lt.s32.totalorder %s309_s26, %s309_s26 }
  0x49   : > { %p1761_p7 = scmp.ne.s32.totalorder %s309_s26, %s1760_s21  ;;  %p1769_p4 = scmp.lt.s32.totalorder %s1760_s21, %s1760_s21 }
  0x4b   : > { %p1763_p9 = pnand %p1761_p7, %p1987_p10  ;;  %p1770_p5 = por %p1769_p4, %p1768_p1 }
  0x4d   : > { %p1764_p11 = pneg %p1763_p9 }
  0x4f   : > { %p1771_p6 = pnand %p1770_p5, %p1764_p11 }
  0x51   : > { %1774 = shalt.err (!%p1771_p6)
}
  0x52   : > { %1599 = dma.hbm_to_vmem [thread:$0]  (!%p1971_p8), %s2301_s4, 512, %s309_s26, [#allocation12], %s1870_s25, %s1870_s25, %s1871_s27  }
  0x53   : > { %s2060_s12 = sadd.s32 1, %s1865_s16   ;;  %s33_s10 = sadd.s32 1, %s1861_s15 }
  0x54   : > { %s30_s22 = ssub.s32 %s1865_s16, %s2060_s12  ;;  %p40_p6 = scmp.ne.s32.totalorder %s1861_s15, %s1857_s14 }
  0x55   : > { %p31_p5 = scmp.eq.s32.totalorder %s30_s22, 0  ;;  %p41_p10 = scmp.eq.s32.totalorder %s1865_s16, 0 }
  0x56   : > { %p1607_p12 = scmp.lt.s32.totalorder %s1865_s16, 2  ;;  %s337_s29 = sand.u32 1, %s1861_s15  }
  0x57   : > { %s2070_s28 = scalar_select %p31_p5, %s1861_s15, %s33_s10  }
  0x58   : > { %p42_p13 = por %p41_p10, %p40_p6  ;;  %s1358_s30 = sshll.u32 %s337_s29, 4 }
  0x59   : > { %s1400_s11 = sshll.u32 %s1865_s16, 8  ;;  %s341_s26 = scalar_lea.vmem [#allocation5], %s1358_s30 }
  0x5a   : > { %s2077_s23 = scalar_lea.hbm %s2297_s0, %s1400_s11  ;;  %s348_s21 = sshll.u32 %s341_s26, 4  ;;  %s2079_s21 = int_to_ptr.vmem [resolvable:$true] %s348_s21 }
  0x5b   : > { %p2081_p8 = pnand %p1607_p12, %p42_p13  ;;  %s2085_s16 = scalar_lea.sflag [#allocation6], %s337_s29 }
  0x5c   : > { %s1775_s5 = scalar_lea.hbm %s2077_s23, 256  ;;  %s1780_s30 = scalar_lea.hbm %s2297_s0, 512 }
  0x5d   : > { %p1776_p0 = scmp.ne.s32.totalorder %s2077_s23, %s1775_s5  ;;  %p1777_p2 = pneg %p2081_p8 }
  0x5e   : > { %p1781_p9 = scmp.lt.u32.totalorder %s2077_s23, %s2297_s0  ;;  %p1782_p11 = scmp.lt.u32.totalorder %s1780_s30, %s1775_s5 }
  0x5f   : > { %p1778_p3 = pnand %p1777_p2, %p1776_p0  ;;  %p1784_p4 = scmp.lt.u32.totalorder %s1775_s5, %s2077_s23 }
  0x60   : > { %p1783_p1 = por %p1782_p11, %p1781_p9 }
  0x61   : > { %p1779_p7 = pneg %p1778_p3 }
  0x62   : > { %p1785_p5 = por %p1784_p4, %p1783_p1 }
  0x64   : > { %p1786_p6 = pnand %p1785_p5, %p1779_p7 }
  0x66   : > { %1789 = shalt.err (!%p1786_p6)
}
  0x67   : > { %s1790_s29 = scalar_lea.vmem %s2079_s21, 256  ;;  %s1872_s20 = smov [#allocation5]  }
  0x68   : > { %p1791_p10 = scmp.ne.s32.totalorder %s2079_s21, %s1790_s29  ;;  %s1795_s26 = sshll.u32 %s1872_s20, 4  ;;  %s1796_s26 = int_to_ptr.vmem [resolvable:$false] %s1795_s26 }
  0x69   : > { %s1797_s22 = scalar_lea.vmem %s1796_s26, 512  ;;  %p1798_p0 = scmp.lt.s32.totalorder %s2079_s21, %s1796_s26 }
  0x6a   : > { %p1793_p12 = pnand %p1791_p10, %p1777_p2  ;;  %p1799_p3 = scmp.lt.s32.totalorder %s1797_s22, %s1790_s29 }
  0x6c   : > { %p1794_p13 = pneg %p1793_p12  ;;  %p1800_p9 = por %p1799_p3, %p1798_p0 }
  0x6e   : > { %p1801_p11 = pnand %p1800_p9, %p1794_p13 }
  0x70   : > { %1804 = shalt.err (!%p1801_p11)
}
  0x71   : > { %1603 = dma.hbm_to_vmem [thread:$0]  (!%p2081_p8), %s2077_s23, 256, %s2079_s21, %s2085_s16, %s1870_s25, %s1870_s25, %s1871_s27  }
  0x72   : > { %p2318_p2 = scmp.ne.s32.totalorder %s2314_s19, 0 }
  0x73   : > { %s362_s5 = sand.u32 (!%p2318_p2), 1, %s1857_s14   ;;  %p2319_p7 = scmp.ne.s32.totalorder (!%p2318_p2), %s2313_s18, 0 }
  0x74   : > { %360 = sbr.rel (%p2318_p2) target bundleno = 2257 (0x8d1), region = 60  ;;  %s2119_s10 = sshll.u32 (!%p2318_p2), %s362_s5, 4 }
  0x75   : > { %s363_s30 = scalar_lea.sflag (!%p2318_p2), [#allocation6], %s362_s5  ;;  %s366_s11 = scalar_lea.vmem (!%p2318_p2), [#allocation5], %s2119_s10 }
  0x7b   : > { %1836 = dma.done.wait (%p2319_p7), %s363_s30, 256  }
  0x7c   : > { %1838 = vsyncadd (%p2319_p7), %s363_s30, 4294967040  ;;  %p2320_p1 = scmp.eq.s32.totalorder %s1948_s17, 0 }
  0x7e   : > { %1840 = dma.done.wait (%p2320_p1), [#allocation9], 768   ;;  %p2321_p8 = pmov %p2320_p1 }
  0x7f   : > { %p2322_p4 = pmov %p2320_p1 }
  0x80   : > { %1842 = vsyncadd (%p2321_p8), [#allocation9], 4294966528 }
  0x81   : > { %1844 = dma.done.wait (%p2322_p4), [#allocation12], 512   ;;  %p2323_p5 = pmov %p2320_p1 }
  0x82   : > { %v410_v0 = vlaneseq  ;;  %v2148_v4 = vld [vmem:[%s2303_s6] sm:$0xff]   ;;  %p2324_p6 = scmp.ne.s32.totalorder %s1948_s17, 0 }
  0x83   : > { %1846 = vsyncadd (%p2323_p5), [#allocation12], 4294966784  ;;  %v2153_v5 = vld [vmem:[%s2304_s7] sm:$0xff]   ;;  %v1403_v7 = vunpack.c.l.bf16 %v2148_v4  ;;  %v1404_v8 = vunpack.c.h.bf16 %v2148_v4  ;;  %v440_v17 = vld [vmem:[#allocation10 + $0x8] sm:$0xff] (!%p2324_p6)  ;;  %vm450_vm2 = vcmask (!%p2324_p6), 261120   ;;  %s2325_s22 = sld [smem:[#allocation18_spill]] (!%p2324_p6) }
  0x84   : > { %v2134_v1 = vshrl.u32 %v410_v0, 7  ;;  %v2136_v2 = vand.u32 127, %v410_v0  ;;  %v2158_v6 = vld [vmem:[%s2305_s8] sm:$0xff]   ;;  %v1407_v9 = vunpack.c.l.bf16 %v2153_v5  ;;  %v1408_v10 = vunpack.c.h.bf16 %v2153_v5  ;;  %436 = sbr.rel (%p2324_p6) target bundleno = 1009 (0x3f1), region = 80  ;;  %v441_v18 = vld [vmem:[#allocation10 + $0x10] sm:$0xff] (!%p2324_p6)  ;;  %v543_v25 = vld [vmem:[#allocation11 + $0x8] sm:$0xff] (!%p2324_p6) }
  0x85   : > { %v2167_v11 = vld [vmem:[%s2306_s9] sm:$0xff]   ;;  %v1411_v12 = vunpack.c.l.bf16 %v2158_v6  ;;  %v1412_v13 = vunpack.c.h.bf16 %v2158_v6  ;;  %v437_v21 = vld [vmem:[#allocation8] sm:$0xff] (!%p2324_p6)  ;;  %vm1535_vm5 = vmpackc.low (!%p2324_p6), %vm450_vm2, %vm450_vm2  ;;  %vm745_vm6 = vcmask (!%p2324_p6), 130048   ;;  %vm755_vm7 = vcmask (!%p2324_p6), 122880  }
  0x86   : > { %v2139_v3 = vadd.s32 8, %v2134_v1  ;;  %vm415_vm0 = vcmp.eq.s32.totalorder %v2134_v1, %v2136_v2  ;;  %v1415_v14 = vunpack.c.l.bf16 %v2167_v11  ;;  %v1416_v15 = vunpack.c.h.bf16 %v2167_v11  ;;  %v439_v16 = vld [vmem:[#allocation10] sm:$0xff] (!%p2324_p6)  ;;  %v442_v20 = vld [vmem:[#allocation10 + $0x18] sm:$0xff] (!%p2324_p6)  ;;  %1461 = vmatprep.mubr.msk.f32.mxu0 (!%p2324_p6), %vm450_vm2, %v437_v21  ;;  %v544_v26 = vld [vmem:[#allocation11 + $0x10] sm:$0xff] (!%p2324_p6) }
  0x87   : > { %v1518_v19 = vpack.c.bf16 (!%p2324_p6), %v440_v17, %v439_v16  ;;  %v1522_v22 = vpack.c.bf16 (!%p2324_p6), %v442_v20, %v441_v18  ;;  %v438_v23 = vld [vmem:[#allocation8 + $0x8] sm:$0xff] (!%p2324_p6)  ;;  %v542_v24 = vld [vmem:[#allocation11] sm:$0xff] (!%p2324_p6) }
  0x88   : > { %vm416_vm1 = vcmp.eq.s32.totalorder %v2139_v3, %v2136_v2  ;;  %v1526_v27 = vpack.c.bf16 (!%p2324_p6), %v543_v25, %v542_v24  ;;  %v545_v28 = vld [vmem:[#allocation11 + $0x18] sm:$0xff] (!%p2324_p6) }
  0x89   : > { %1519 = vmatprep.subr.bf16.mxu0 (!%p2324_p6), %v1518_v19  ;;  %v1530_v29 = vpack.c.bf16 (!%p2324_p6), %v545_v28, %v544_v26  ;;  %v1367_v30 = vld [vmem:[%s2300_s3] ss:$0 sm:$0xff] (!%p2324_p6) }
  0x8a   : > { %1521 = vmatpush3.bf16.msra.mxu0 (!%p2324_p6), %v1518_v19  ;;  %1527 = vmatprep.subr.bf16.mxu1 (!%p2324_p6), %v1526_v27  ;;  %v1372_v43 = vld [vmem:[%s2325_s22] ss:$0 sm:$0xff] (!%p2324_p6) }
  0x8b   : > { %1523 = vmatprep.subr.bf16.mxu0 %v1522_v22  ;;  %1529 = vmatpush3.bf16.msra.mxu1 %v1526_v27 }
  0x8c   : > { %1531 = vmatprep.subr.bf16.mxu1 %v1530_v29 }
  0x8e   : > { %1525 = vmatpush3.bf16.msra.mxu0 %v1522_v22 }
  0x8f   : > { %1533 = vmatpush3.bf16.msra.mxu1 %v1530_v29 }
  0x91   : > { %1462 = vmatmul.mubr.msk.f32.vlgmr.msra.gmra.mrb[0].mxu0 %vm450_vm2, %v438_v23 }
 0x164   : > { %v1463_v31 = vpop.f32.mrb[0].mxu0 }
 0x165   : > { %v529_v32 = vadd.f32 %v1463_v31, %v1367_v30  ;;  %v523_v33 = vpop.f32.mrb[1].mxu0 }
 0x166   : > { %v524_v34 = vadd.f32 %v1367_v30, %v523_v33 }
 0x167   : > { %v536_v35 = vmul.f32 1.442695, %v529_v32  ;;  %vm533_vm4 = vcmp.gt.f32.partialorder %v529_v32, 0.0 }
 0x168   : > { %v534_v36 = vmul.f32 1.442695, %v524_v34  ;;  %vm532_vm3 = vcmp.gt.f32.partialorder %v524_v34, 0.0 }
 0x169   : > { %1651 = vpow2.f32 %v536_v35 }
 0x16a   : > { %1653 = vpow2.f32 %v534_v36 }
 0x173   : > { %v1652_v37 = vpop.eup %1651 }
 0x174   : > { %v1654_v38 = vpop.eup %1653  ;;  %v1371_v39 = vadd.f32 -1.0, %v1652_v37 }
 0x175   : > { %v1370_v40 = vadd.f32 -1.0, %v1654_v38 }
 0x176   : > { %v541_v42 = vsel %vm533_vm4, %v529_v32, %v1371_v39 }
 0x177   : > { %v540_v41 = vsel %vm532_vm3, %v524_v34, %v1370_v40 }
 0x178   : > { %1472 = vmatprep.mubr.msk.f32.mxu1 %vm450_vm2, %v540_v41 }
 0x179   : > { %1473 = vmatmul.mubr.msk.f32.vlgmr.msra.gmra.mrb[0].mxu1 %vm450_vm2, %v541_v42 }
 0x24c   : > { %v1474_v44 = vpop.f32.mrb[0].mxu1 }
 0x24d   : > { %v625_v45 = vpop.f32.mrb[1].mxu1  ;;  %v631_v46 = vadd.f32 %v1474_v44, %v1372_v43 }
 0x24e   : > { %v626_v47 = vadd.f32 %v1372_v43, %v625_v45 }
 0x24f   : > { %v635_v50 = vmul.f32 %v631_v46, %v631_v46 }
 0x250   : > { %v634_v48 = vmul.f32 %v626_v47, %v626_v47 }
 0x251   : > { %v639_v51 = vsel %vm450_vm2, %v635_v50, 0.0 }
 0x252   : > { %v636_v49 = vsel %vm450_vm2, %v634_v48, 0.0 }
 0x253   : > { %637 = vadd.xlane.f32.xlu0 %v636_v49 }
 0x257   : > { %640 = vadd.xlane.f32.xlu0 %v639_v51 }
 0x2e0   : > { %v638_v52 = vpop.xlane.xlu0 %637 }
 0x2e1   : > { %1655 = vrsqrt.f32 %v638_v52 }
 0x2e4   : > { %v641_v53 = vpop.xlane.xlu0 %640 }
 0x2e5   : > { %1657 = vrsqrt.f32 %v641_v53 }
 0x2eb   : > { %v1656_v54 = vpop.eup %1655 }
 0x2ec   : > { %v644_v55 = vmul.f32 %v1656_v54, %v626_v47 }
 0x2ee   : > { %646 = vst.msk [vmem:[#allocation2] sm:$0xff] %vm450_vm2, %v644_v55  ;;  %v648_v56 = vmul.f32 1.25, %v644_v55 }
 0x2ef   : > { %v1658_v57 = vpop.eup %1657 }
 0x2f0   : > { %v645_v58 = vmul.f32 %v1658_v57, %v631_v46  ;;  %1479 = vmatprep.mubr.msk.f32.mxu0 %vm450_vm2, %v648_v56 }
 0x2f2   : > { %647 = vst.msk [vmem:[#allocation2 + $0x8] sm:$0xff] %vm450_vm2, %v645_v58  ;;  %v1534_v59 = vpack.c.bf16 %v645_v58, %v644_v55  ;;  %v649_v60 = vmul.f32 1.25, %v645_v58 }
 0x2f4   : > { %1536 = vmatprep.subr.msk.bf16.mxu0 %vm1535_vm5, %v1534_v59 }
 0x2f5   : > { %1539 = vmatpush3.bf16.xpose.msk.msra.mxu0 %vm1535_vm5, %v1534_v59 }
 0x2fc   : > { %1480 = vmatmul.mubr.msk.f32.vlgmr.msra.gmra.mrb[2].mxu0 %vm450_vm2, %v649_v60 }
 0x3cf   : > { %v1481_v61 = vpop.f32.mrb[2].mxu0 }
 0x3d0   : > { %v739_v62 = vmul.f32 1.442695, %v1481_v61  ;;  %v728_v63 = vpop.f32.mrb[3].mxu0 }
 0x3d1   : > { %v737_v0 = vmul.f32 1.442695, %v728_v63 }
 0x3d2   : > { %1659 = vpow2.f32 %v739_v62 }
 0x3d3   : > { %1661 = vpow2.f32 %v737_v0 }
 0x3dc   : > { %v1660_v16 = vpop.eup %1659 }
 0x3dd   : > { %v1662_v17 = vpop.eup %1661  ;;  %v742_v18 = vsel %vm416_vm1, 0.0, %v1660_v16  ;;  %v744_v19 = vmul.f32 %v1660_v16, %v1412_v13 }
 0x3de   : > { %v758_v20 = vmul.f32 %v1416_v15, %v742_v18  ;;  %v741_v21 = vsel %vm415_vm0, 0.0, %v1662_v17  ;;  %v743_v22 = vmul.f32 %v1662_v17, %v1411_v12 }
 0x3df   : > { %v747_v23 = vsel %vm745_vm6, %v744_v19, 0.0  ;;  %v757_v24 = vmul.f32 %v1415_v14, %v741_v21 }
 0x3e0   : > { %v760_v25 = vsel %vm745_vm6, %v758_v20, 0.0  ;;  %v746_v26 = vsel %vm745_vm6, %v743_v22, 0.0 }
 0x3e1   : > { %v748_v27 = vadd.f32 %v747_v23, %v746_v26  ;;  %v759_v28 = vsel %vm745_vm6, %v757_v24, 0.0 }
 0x3e2   : > { %v761_v29 = vadd.f32 %v760_v25, %v759_v28 }
 0x3e3   : > { %v749_v30 = vrot.slane %v748_v27, 4 }
 0x3e4   : > { %v762_v31 = vrot.slane %v761_v29, 4 }
 0x3e5   : > { %v750_v32 = vadd.f32 %v749_v30, %v748_v27 }
 0x3e6   : > { %v763_v33 = vadd.f32 %v762_v31, %v761_v29 }
 0x3e7   : > { %v751_v34 = vrot.slane %v750_v32, 2 }
 0x3e8   : > { %v764_v35 = vrot.slane %v763_v33, 2 }
 0x3e9   : > { %v752_v36 = vadd.f32 %v751_v34, %v750_v32 }
 0x3ea   : > { %v765_v37 = vadd.f32 %v764_v35, %v763_v33 }
 0x3eb   : > { %v753_v38 = vrot.slane %v752_v36, 1 }
 0x3ec   : > { %v766_v39 = vrot.slane %v765_v37, 1 }
 0x3ed   : > { %v754_v40 = vadd.f32 %v753_v38, %v752_v36 }
 0x3ee   : > { %v767_v41 = vadd.f32 %v766_v39, %v765_v37 }
 0x3ef   : > { %756 = vst.msk [vmem:[#allocation3] sm:$0x1] %vm755_vm7, %v754_v40 }
 0x3f0   : > { %768 = vst.msk [vmem:[#allocation4] sm:$0x1] %vm755_vm7, %v767_v41 }
 0x3f1 PF: > { %v773_v42 = vld [vmem:[#allocation10] sm:$0xff]  ;;  %v774_v43 = vld [vmem:[#allocation10 + $0x8] sm:$0xff]  ;;  %v775_v44 = vld [vmem:[#allocation10 + $0x10] sm:$0xff]  ;;  %vm784_vm8 = vcmask 261120   ;;  %s2326_s18 = sld [smem:[#allocation18_spill]]  ;;  %vm1164_vm12 = vcmask 130048  }
 0x3f2   : > { %v1540_v45 = vpack.c.bf16 %v774_v43, %v773_v42  ;;  %v776_v46 = vld [vmem:[#allocation10 + $0x18] sm:$0xff]  ;;  %v771_v47 = vld [vmem:[%s366_s11] sm:$0xff]  ;;  %v877_v51 = vld [vmem:[#allocation11 + $0x8] sm:$0xff]  ;;  %vm1242_vm13 = vcmask 122880   ;;  %vm1193_vm14 = vcmask 7168   ;;  %s1395_s24 = sshll.u32 %s1948_s17, 7 }
 0x3f3   : > { %v1544_v48 = vpack.c.bf16 %v776_v46, %v775_v44  ;;  %1490 = vmatprep.mubr.msk.f32.mxu0 %vm784_vm8, %v771_v47  ;;  %v772_v49 = vld [vmem:[%s366_s11 + $0x8] sm:$0xff]  ;;  %v876_v50 = vld [vmem:[#allocation11] sm:$0xff]  ;;  %v878_v52 = vld [vmem:[#allocation11 + $0x10] sm:$0xff]  ;;  %s2329_s26 = sld [smem:[#allocation19_spill]]  ;;  %p1611_p10 = scmp.eq.s32.totalorder %s1948_s17, 1 }
 0x3f4   : > { %1541 = vmatprep.subr.bf16.mxu0 %v1540_v45  ;;  %v1548_v53 = vpack.c.bf16 %v877_v51, %v876_v50  ;;  %v879_v54 = vld [vmem:[#allocation11 + $0x18] sm:$0xff]  ;;  %v770_v30 = vld [vmem:[#allocation2 + $0x8] sm:$0xff]  ;;  %vm2225_vm11 = vmpackc.low %vm784_vm8, %vm784_vm8  ;;  %s1261_s10 = scalar_lea.smem [#allocation13], %s1395_s24 }
 0x3f5   : > { %1543 = vmatpush3.bf16.msra.mxu0 %v1540_v45  ;;  %v1552_v55 = vpack.c.bf16 %v879_v54, %v878_v52  ;;  %v1379_v56 = vld [vmem:[%s2300_s3] ss:$0 sm:$0xff] }
 0x3f6   : > { %1545 = vmatprep.subr.bf16.mxu0 %v1544_v48  ;;  %1549 = vmatprep.subr.bf16.mxu1 %v1548_v53  ;;  %v769_v29 = vld [vmem:[#allocation2] sm:$0xff] }
 0x3f7   : > { %1551 = vmatpush3.bf16.msra.mxu1 %v1548_v53  ;;  %v1384_v20 = vld [vmem:[%s2326_s18] ss:$0 sm:$0xff]  ;;  %v1556_v31 = vpack.c.bf16 %v770_v30, %v769_v29 }
 0x3f8   : > { %1553 = vmatprep.subr.bf16.mxu1 %v1552_v55 }
 0x3f9   : > { %1547 = vmatpush3.bf16.msra.mxu0 %v1544_v48  ;;  %s1270_s22 = sshll.u32 %s2329_s26, 4  ;;  %s1271_s22 = int_to_ptr.vmem [resolvable:$true] %s1270_s22 }
 0x3fa   : > { %1558 = vmatprep.subr.msk.bf16.mxu0 %vm2225_vm11, %v1556_v31  ;;  %s1805_s11 = scalar_lea.vmem %s1271_s22, 32  ;;  %p1812_p3 = scmp.lt.s32.totalorder %s1271_s22, %s1271_s22 }
 0x3fb   : > { %1555 = vmatpush3.bf16.msra.mxu1 %v1552_v55  ;;  %p1806_p12 = scmp.ne.s32.totalorder %s1271_s22, %s1805_s11  ;;  %p1813_p9 = scmp.lt.s32.totalorder %s1805_s11, %s1805_s11 }
 0x3fc   : > { %1491 = vmatmul.mubr.msk.f32.vlgmr.msra.gmra.mrb[0].mxu0 %vm784_vm8, %v772_v49 }
 0x3fd   : > { %p1807_p13 = pnand %p1806_p12, %p1611_p10  ;;  %p1814_p11 = por %p1813_p9, %p1812_p3 }
 0x3ff   : > { %p1808_p0 = pneg %p1807_p13 }
 0x401   : > { %p1815_p2 = pnand %p1814_p11, %p1808_p0 }
 0x402   : > { %1561 = vmatpush3.bf16.xpose.msk.msra.mxu0 %vm2225_vm11, %v1556_v31 }
 0x4cf   : > { %v1492_v57 = vpop.f32.mrb[0].mxu0 }
 0x4d0   : > { %v863_v58 = vadd.f32 %v1492_v57, %v1379_v56  ;;  %v857_v59 = vpop.f32.mrb[1].mxu0 }
 0x4d1   : > { %v858_v60 = vadd.f32 %v1379_v56, %v857_v59 }
 0x4d2   : > { %v870_v61 = vmul.f32 1.442695, %v863_v58  ;;  %vm867_vm10 = vcmp.gt.f32.partialorder %v863_v58, 0.0 }
 0x4d3   : > { %v868_v62 = vmul.f32 1.442695, %v858_v60  ;;  %vm866_vm9 = vcmp.gt.f32.partialorder %v858_v60, 0.0 }
 0x4d4   : > { %1663 = vpow2.f32 %v870_v61 }
 0x4d5   : > { %1665 = vpow2.f32 %v868_v62 }
 0x4de   : > { %v1664_v63 = vpop.eup %1663 }
 0x4df   : > { %v1666_v0 = vpop.eup %1665  ;;  %v1383_v16 = vadd.f32 -1.0, %v1664_v63 }
 0x4e0   : > { %v1382_v17 = vadd.f32 -1.0, %v1666_v0 }
 0x4e1   : > { %v875_v19 = vsel %vm867_vm10, %v863_v58, %v1383_v16 }
 0x4e2   : > { %v874_v18 = vsel %vm866_vm9, %v858_v60, %v1382_v17 }
 0x4e3   : > { %1501 = vmatprep.mubr.msk.f32.mxu1 %vm784_vm8, %v874_v18 }
 0x4e4   : > { %1502 = vmatmul.mubr.msk.f32.vlgmr.msra.gmra.mrb[0].mxu1 %vm784_vm8, %v875_v19 }
 0x5b7   : > { %v1503_v21 = vpop.f32.mrb[0].mxu1 }
 0x5b8   : > { %v959_v22 = vpop.f32.mrb[1].mxu1  ;;  %v965_v23 = vadd.f32 %v1503_v21, %v1384_v20 }
 0x5b9   : > { %v960_v24 = vadd.f32 %v1384_v20, %v959_v22 }
 0x5ba   : > { %v969_v27 = vmul.f32 %v965_v23, %v965_v23 }
 0x5bb   : > { %v968_v25 = vmul.f32 %v960_v24, %v960_v24 }
 0x5bc   : > { %v973_v28 = vsel %vm784_vm8, %v969_v27, 0.0  ;;  %v1235_v27 = vld [vmem:[#allocation4] sm:$0x1] }
 0x5bd   : > { %v970_v26 = vsel %vm784_vm8, %v968_v25, 0.0 }
 0x5be   : > { %971 = vadd.xlane.f32.xlu0 %v970_v26 }
 0x5c2   : > { %974 = vadd.xlane.f32.xlu0 %v973_v28 }
 0x64b   : > { %v972_v33 = vpop.xlane.xlu0 %971 }
 0x64c   : > { %1667 = vrsqrt.f32 %v972_v33 }
 0x64f   : > { %v975_v34 = vpop.xlane.xlu0 %974 }
 0x650   : > { %1669 = vrsqrt.f32 %v975_v34 }
 0x656   : > { %v1668_v35 = vpop.eup %1667 }
 0x657   : > { %v978_v36 = vmul.f32 %v1668_v35, %v960_v24 }
 0x659   : > { %v980_v37 = vmul.f32 1.25, %v978_v36 }
 0x65a   : > { %v1670_v38 = vpop.eup %1669 }
 0x65b   : > { %v979_v39 = vmul.f32 %v1670_v38, %v965_v23  ;;  %1508 = vmatprep.mubr.msk.f32.mxu0 %vm784_vm8, %v980_v37  ;;  %1515 = vmatprep.mubr.msk.f32.mxu1 %vm784_vm8, %v980_v37 }
 0x65d   : > { %v981_v40 = vmul.f32 1.25, %v979_v39  ;;  %v1562_v41 = vpack.c.bf16 %v979_v39, %v978_v36 }
 0x65f   : > { %1509 = vmatmul.mubr.msk.f32.vlgmr.msra.gmra.mrb[2].mxu0 %vm784_vm8, %v981_v40  ;;  %1564 = vmatprep.subr.msk.bf16.mxu1 %vm2225_vm11, %v1562_v41 }
 0x660   : > { %1567 = vmatpush3.bf16.xpose.msk.msra.mxu1 %vm2225_vm11, %v1562_v41 }
 0x667   : > { %1516 = vmatmul.mubr.msk.f32.vlgmr.msra.gmra.mrb[2].mxu1 %vm784_vm8, %v981_v40 }
 0x732   : > { %v1510_v42 = vpop.f32.mrb[2].mxu0 }
 0x733   : > { %v1071_v43 = vmul.f32 1.442695, %v1510_v42  ;;  %v1060_v44 = vpop.f32.mrb[3].mxu0 }
 0x734   : > { %v1069_v45 = vmul.f32 1.442695, %v1060_v44 }
 0x735   : > { %1671 = vpow2.f32 %v1071_v43 }
 0x736   : > { %1673 = vpow2.f32 %v1069_v45 }
 0x73a   : > { %v1517_v46 = vpop.f32.mrb[2].mxu1 }
 0x73b   : > { %v1156_v47 = vmul.f32 1.442695, %v1517_v46  ;;  %v1145_v48 = vpop.f32.mrb[3].mxu1 }
 0x73c   : > { %v1154_v49 = vmul.f32 1.442695, %v1145_v48 }
 0x73d   : > { %1675 = vpow2.f32 %v1156_v47 }
 0x73e   : > { %1677 = vpow2.f32 %v1154_v49 }
 0x73f   : > { %v1672_v50 = vpop.eup %1671 }
 0x740   : > { %v1674_v51 = vpop.eup %1673  ;;  %v1211_v52 = vmul.f32 %v1672_v50, %v1412_v13  ;;  %v1225_v53 = vmul.f32 %v1672_v50, %v1416_v15 }
 0x741   : > { %v1210_v54 = vmul.f32 %v1674_v51, %v1411_v12  ;;  %v1224_v55 = vmul.f32 %v1674_v51, %v1415_v14 }
 0x742   : > { %v1213_v56 = vsel %vm1164_vm12, %v1211_v52, 0.0  ;;  %v1227_v57 = vsel %vm1164_vm12, %v1225_v53, 0.0 }
 0x743   : > { %v1212_v58 = vsel %vm1164_vm12, %v1210_v54, 0.0  ;;  %v1226_v59 = vsel %vm1164_vm12, %v1224_v55, 0.0 }
 0x744   : > { %v1214_v60 = vadd.f32 %v1213_v56, %v1212_v58  ;;  %v1228_v61 = vadd.f32 %v1227_v57, %v1226_v59 }
 0x746   : > { %v1215_v13 = vrot.slane %v1214_v60, 4  ;;  %v1229_v62 = vrot.slane %v1228_v61, 4 }
 0x747   : > { %v1676_v63 = vpop.eup %1675 }
 0x748   : > { %v1678_v15 = vpop.eup %1677  ;;  %v1161_v0 = vadd.f32 %v1676_v63, %v1672_v50  ;;  %v1159_v6 = vsel %vm416_vm1, 0.0, %v1676_v63  ;;  %v1216_v11 = vadd.f32 %v1215_v13, %v1214_v60  ;;  %v1230_v12 = vadd.f32 %v1229_v62, %v1228_v61 }
 0x749   : > { %v1158_v14 = vsel %vm415_vm0, 0.0, %v1678_v15  ;;  %v1160_v16 = vadd.f32 %v1678_v15, %v1674_v51  ;;  %v1174_v17 = vadd.f32 %v1672_v50, %v1159_v6 }
 0x74a   : > { %v1163_v18 = vmul.f32 %v1404_v8, %v1161_v0  ;;  %v1173_v19 = vadd.f32 %v1674_v51, %v1158_v14  ;;  %v1217_v20 = vrot.slane %v1216_v11, 2  ;;  %v1231_v21 = vrot.slane %v1230_v12, 2  ;;  %v1221_v8 = vld [vmem:[#allocation3] sm:$0x1] }
 0x74b   : > { %v1162_v22 = vmul.f32 %v1403_v7, %v1160_v16  ;;  %v1176_v4 = vmul.f32 %v1408_v10, %v1174_v17 }
 0x74c   : > { %v1168_v3 = vsel %vm1164_vm12, %v1163_v18, 0.0  ;;  %v1175_v23 = vmul.f32 %v1407_v9, %v1173_v19  ;;  %v1218_v24 = vadd.f32 %v1217_v20, %v1216_v11  ;;  %v1232_v25 = vadd.f32 %v1231_v21, %v1230_v12 }
 0x74d   : > { %1169 = vadd.xlane.f32.xlu1 %v1168_v3  ;;  %v1165_v28 = vsel %vm1164_vm12, %v1162_v22, 0.0  ;;  %v1180_v31 = vsel %vm1164_vm12, %v1176_v4, 0.0 }
 0x74e   : > { %v1177_v1 = vsel %vm1164_vm12, %v1175_v23, 0.0  ;;  %v1219_v2 = vrot.slane %v1218_v24, 1  ;;  %v1233_v26 = vrot.slane %v1232_v25, 1 }
 0x74f   : > { %1178 = vadd.xlane.f32.xlu0 %v1177_v1 }
 0x750   : > { %v1220_v7 = vadd.f32 %v1219_v2, %v1218_v24  ;;  %v1234_v29 = vadd.f32 %v1233_v26, %v1232_v25 }
 0x751   : > { %1166 = vadd.xlane.f32.xlu1 %v1165_v28 }
 0x752   : > { %v1222_v30 = vadd.f32 %v1221_v8, %v1220_v7  ;;  %v1236_v9 = vadd.f32 %v1235_v27, %v1234_v29 }
 0x754   : > { %v1223_v32 = vadd.f32 1e-08, %v1222_v30  ;;  %1679 = vlog2.f32 %v1236_v9 }
 0x755   : > { %1181 = vadd.xlane.f32.xlu1 %v1180_v31 }
 0x756   : > { %1681 = vlog2.f32 %v1223_v32 }
 0x75e   : > { %v1680_v33 = vpop.eup %1679 }
 0x75f   : > { %v1238_v35 = vmul.f32 0.6931472, %v1680_v33 }
 0x760   : > { %v1682_v34 = vpop.eup %1681 }
 0x761   : > { %v1240_v36 = vmul.f32 0.6931472, %v1682_v34 }
 0x763   : > { %v1241_v37 = vsub.f32 %v1238_v35, %v1240_v36 }
 0x765   : > { %v1243_v38 = vsel %vm1242_vm13, %v1241_v37, 0.0 }
 0x766   : > { %1244 = vadd.xlane.f32.xlu1 %v1243_v38 }
 0x7da   : > { %v1170_v5 = vpop.xlane.xlu1 %1169 }
 0x7db   : > { %v1172_v10 = vadd.f32 1e-08, %v1170_v5 }
 0x7dc   : > { %v1179_v39 = vpop.xlane.xlu0 %1178 }
 0x7dd   : > { %1683 = vlog2.f32 %v1179_v39 }
 0x7de   : > { %v1167_v40 = vpop.xlane.xlu1 %1166  ;;  %1685 = vlog2.f32 %v1172_v10 }
 0x7df   : > { %v1171_v41 = vadd.f32 1e-08, %v1167_v40 }
 0x7e1   : > { %1687 = vlog2.f32 %v1171_v41 }
 0x7e2   : > { %v1182_v42 = vpop.xlane.xlu1 %1181 }
 0x7e3   : > { %1689 = vlog2.f32 %v1182_v42 }
 0x7e7   : > { %v1684_v43 = vpop.eup %1683 }
 0x7e8   : > { %v1686_v44 = vpop.eup %1685  ;;  %v1184_v46 = vmul.f32 0.6931472, %v1684_v43 }
 0x7e9   : > { %v1190_v49 = vmul.f32 0.6931472, %v1686_v44 }
 0x7eb   : > { %v1688_v45 = vpop.eup %1687 }
 0x7ec   : > { %v1188_v47 = vmul.f32 0.6931472, %v1688_v45 }
 0x7ed   : > { %v1690_v48 = vpop.eup %1689 }
 0x7ee   : > { %v1186_v50 = vmul.f32 0.6931472, %v1690_v48  ;;  %v1191_v51 = vsub.f32 %v1184_v46, %v1188_v47 }
 0x7f0   : > { %v1192_v52 = vsub.f32 %v1186_v50, %v1190_v49  ;;  %v1194_v53 = vsel %vm1193_vm14, %v1191_v51, 0.0 }
 0x7f2   : > { %v1195_v54 = vsel %vm1193_vm14, %v1192_v52, 0.0 }
 0x7f3   : > { %v1196_v55 = vadd.f32 %v1195_v54, %v1194_v53  ;;  %v1245_v56 = vpop.xlane.xlu1 %1244 }
 0x7f4   : > { %v1246_v57 = vrot.slane %v1245_v56, 4 }
 0x7f5   : > { %1197 = vadd.xlane.f32.xlu0 %v1196_v55 }
 0x7f6   : > { %v1247_v58 = vadd.f32 %v1246_v57, %v1245_v56 }
 0x7f8   : > { %v1248_v59 = vrot.slane %v1247_v58, 2 }
 0x7fa   : > { %v1249_v62 = vadd.f32 %v1248_v59, %v1247_v58 }
 0x7fc   : > { %v1250_v0 = vrot.slane %v1249_v62, 1 }
 0x7fe   : > { %v1251_v12 = vadd.f32 %v1250_v0, %v1249_v62 }
 0x882   : > { %v1198_v60 = vpop.xlane.xlu0 %1197 }
 0x883   : > { %v1199_v61 = vrot.slane %v1198_v60, 4 }
 0x885   : > { %v1200_v13 = vadd.f32 %v1199_v61, %v1198_v60 }
 0x887   : > { %v1201_v63 = vrot.slane %v1200_v13, 2 }
 0x889   : > { %v1202_v15 = vadd.f32 %v1201_v63, %v1200_v13 }
 0x88b   : > { %v1203_v6 = vrot.slane %v1202_v15, 1 }
 0x88d   : > { %v1204_v11 = vadd.f32 %v1203_v6, %v1202_v15 }
 0x88f   : > { %1568 = vpush %v1204_v11 }
 0x890   : > { %1570 = vpush %v1251_v12 }
 0x8c0   : > { %s1569_s19 = spop %1568 }
 0x8c1   : > { %s1206_s25 = ssub.f32 0.0, %s1569_s19  ;;  %s1571_s27 = spop %1570 }
 0x8c2   : > { %s1253_s23 = ssub.f32 0.0, %s1571_s27 }
 0x8c3   : > { %s1209_s21 = smul.f32 0.0625, %s1206_s25 }
 0x8c4   : > { %s1256_s16 = smul.f32 0.0625, %s1253_s23 }
 0x8c5   : > { %s1257_s13 = smul.f32 0.5, %s1209_s21 }
 0x8c6   : > { %s1258_s5 = smul.f32 0.5, %s1256_s16 }
 0x8c8   : > { %s1259_s30 = sadd.f32 %s1258_s5, %s1257_s13 }
 0x8ca   : > { %1262 = sst [smem:[%s1261_s10]] %s1259_s30 }
 0x8cb   : > { %1818 = shalt.err (!%p1815_p2)
}
 0x8cc   : > { %s1873_s18 = smov [#allocation13]  }
 0x8cd   : > { %1587 = dma.smem_to_vmem (%p1611_p10), %s1873_s18, 32, %s1271_s22, [#allocation7]  }
 0x8ce   : > { %1848 = dma.done.wait (%p1611_p10), [#allocation7], 32  }
 0x8cf   : > { %1850 = vsyncadd (%p1611_p10), [#allocation7], 4294967264 }
 0x8d0   : > { %1278 = sfence }
 0x8d1 PF: > { %p23_p7 = scmp.ge.s32.totalorder %s2060_s12, 4   ;;  %s2330_s13 = smov %s1857_s14 }
 0x8d2   : > { %s2331_s14 = smov %s1861_s15  ;;  %s2332_s15 = smov %s2070_s28 }
 0x8d3   : > { %s2333_s16 = smov %s2060_s12  ;;  %25 = sbr.rel (!%p23_p7) target bundleno = 9 (0x9), region = 114 }
 0x8da   :  { %1284 = vsyncpa [#allocation6], 1 }
 0x8db   :  { %1286 = vsyncpa [#allocation6 + $0x1], 1 }
 0x8dc   :  { %1287 = vsyncpa [#allocation9], 1 }
 0x8dd   :  { %1288 = vsyncpa [#allocation12], 1 }
 0x8de   :  { %1289 = vsyncpa [#allocation7], 1 }
 0x8df   :  { %1291 = vsyncpa [#allocation7 + $0x1], 1 }

</bundles_post_ra>
